<compile_context>
chip_gen: v7x
topology: tpu7x:2x2x1
jax: 0.10.0
libtpu: 0.0.40
codegen_flags: <defaults>
</compile_context>

<pallas_src>
import functools

import jax
import jax.numpy as jnp
from jax import lax
from jax.experimental import pallas as pl
from jax.experimental.pallas import tpu as pltpu

_LANES = 128


@functools.lru_cache(maxsize=1)
def _device_params():
    """(multi_tensorcore, vmem_capacity_bytes) of the default backend device."""
    kind = ""
    try:
        kind = (jax.devices()[0].device_kind or "").lower()
    except Exception:
        pass
    vmem_cap = None
    try:
        vmem_cap = int(pltpu.get_tpu_info().vmem_capacity_bytes)
    except Exception:
        vmem_cap = None
    if vmem_cap is None:
        # 128 MiB VMEM/core on v5e/v6e; conservative 64 MiB (v7x) otherwise.
        big = ("v5e" in kind) or ("v5 lite" in kind) or ("v6" in kind)
        vmem_cap = (128 if big else 64) * 1024 * 1024
    multi_tc = "7" in kind          # v7x: 2 TensorCores per chip
    return multi_tc, vmem_cap


def _tiling(total, n_operands):
    """Tiling parameters for a flat stream of `total` elements, `n_operands` slabs."""
    multi_tc, vmem_cap = _device_params()
    # Budget for the double-buffered *input* working set; element-wise
    # temporaries + tiny output/accumulators ride in the vmem_limit headroom.
    if (not multi_tc) and vmem_cap >= 100 * 1024 * 1024:    # v5e / v6e (128 MiB)
        in_budget = 24 * 1024 * 1024
        vmem_limit = 80 * 1024 * 1024
    else:                                                    # v7x (64 MiB / TC)
        in_budget = 18 * 1024 * 1024
        vmem_limit = 48 * 1024 * 1024
    max_tile_rows = in_budget // (n_operands * 2 * _LANES * 4)
    max_tile_rows = max(8, (max_tile_rows // 8) * 8)

    rows = pl.cdiv(total, _LANES)
    tile_rows = min(max_tile_rows, rows)      # multiple of 8 unless == rows
    total_tiles = pl.cdiv(rows, tile_rows)

    n_par = 2 if (multi_tc and total_tiles >= 2) else 1
    if n_par == 2 and total_tiles % 2:
        # Nudge the tile size so both TensorCores get the same number of tiles
        # (avoids one wasted clamped duplicate-tile read).
        alt = max(8, ((pl.cdiv(rows, total_tiles + 1) + 7) // 8) * 8)
        if pl.cdiv(rows, alt) % 2 == 0:
            tile_rows = alt
            total_tiles = pl.cdiv(rows, alt)
    tiles_per_par = pl.cdiv(total_tiles, n_par)
    covered_rows = n_par * tiles_per_par * tile_rows
    if covered_rows >= (1 << 31):
        raise ValueError("input too large for 32-bit row indexing in this kernel")
    return dict(rows=rows, tile_rows=tile_rows, total_tiles=total_tiles,
                n_par=n_par, tiles_per_par=tiles_per_par,
                need_mask=(covered_rows * _LANES != total),
                vmem_limit=vmem_limit)


def _as_slab(x, rows):
    """Flatten to (rows, 128). Pads only when numel % 128 != 0 (kernel masks)."""
    flat = x.reshape(-1)
    pad = rows * _LANES - flat.shape[0]
    if pad:
        flat = jnp.pad(flat, (0, pad))
    return flat.reshape(rows, _LANES)


def _make_kernel(n_in, term_fns, has_consts, tp, total):
    tile_rows = tp["tile_rows"]
    tiles_per_par = tp["tiles_per_par"]
    need_mask = tp["need_mask"]
    acc_rows = 8 if tile_rows % 8 == 0 else 1
    full_rows = total // _LANES                   # rows with all 128 lanes valid
    rem = total % _LANES                          # valid lanes of the last row
    full_tiles = total // (tile_rows * _LANES)    # fully interior tiles

    def kernel(*refs):
        i0 = 1 if has_consts else 0
        c_ref = refs[0] if has_consts else None
        in_refs = refs[i0:i0 + n_in]
        out_ref = refs[i0 + n_in]
        accs = refs[i0 + n_in + 1:]

        p = pl.program_id(0)
        k = pl.program_id(1)
        tile_idx = p * tiles_per_par + k

        @pl.when(k == 0)
        def _():
            for a in accs:
                a[...] = jnp.zeros_like(a)

        vals = [r[...].astype(jnp.float32) for r in in_refs]

        def accumulate(valid):
            # One term at a time keeps only ~2 tile-sized temporaries live.
            for a, fn in zip(accs, term_fns):
                t = fn(vals, c_ref)
                if valid is not None:
                    t = jnp.where(valid, t, 0.0)
                if acc_rows == 8:
                    # Pure vreg-wise adds; the 8->1 sublane collapse happens
                    # once in the flush, not every step.
                    a[...] += t.reshape(tile_rows // 8, 8, _LANES).sum(axis=0)
                else:
                    a[...] += jnp.sum(t, axis=0, keepdims=True)

        def masked():
            grow = tile_idx * tile_rows + lax.broadcasted_iota(
                jnp.int32, (tile_rows, _LANES), 0)
            if rem == 0:
                valid = grow < full_rows           # row-only compare
            else:
                lane = lax.broadcasted_iota(jnp.int32, (tile_rows, _LANES), 1)
                valid = (grow < full_rows) | ((grow == full_rows) & (lane < rem))
            accumulate(valid)

        if not need_mask:
            accumulate(None)
        elif full_tiles == 0:
            masked()
        else:
            # Fast unmasked path for interior tiles; the iota/where mask only
            # runs on the partial tail tile and clamped duplicate tiles.
            @pl.when(tile_idx < full_tiles)
            def _():
                accumulate(None)

            @pl.when(tile_idx >= full_tiles)
            def _():
                masked()

        @pl.when(k == pl.num_programs(1) - 1)
        def _():
            for i, a in enumerate(accs):
                out_ref[0, i:i + 1, :] = jnp.sum(a[...], axis=0, keepdims=True)

    return kernel


def _streaming_sums(term_fns, slabs, total, tp, consts=None):
    """Global sums of each term over the flat stream (lane-wide partials)."""
    n_in = len(slabs)
    n_terms = len(term_fns)
    n_par = tp["n_par"]
    tiles_per_par = tp["tiles_per_par"]
    tile_rows = tp["tile_rows"]
    last_tile = tp["total_tiles"] - 1
    acc_rows = 8 if tile_rows % 8 == 0 else 1

    def in_map(p, k):
        # Clamp so an over-covering grid step re-reads the last real tile; its
        # contribution is zeroed by the in-kernel mask.
        return (jnp.minimum(p * tiles_per_par + k, last_tile), 0)

    in_specs, args = [], []
    if consts is not None:
        in_specs.append(pl.BlockSpec(memory_space=pltpu.MemorySpace.SMEM))
        args.append(consts)
    for s in slabs:
        in_specs.append(pl.BlockSpec((tile_rows, _LANES), in_map))
        args.append(s)

    kernel = _make_kernel(n_in, term_fns, consts is not None, tp, total)
    in_bytes = sum(s.size * s.dtype.itemsize for s in slabs)

    if n_par == 2:
        # Really shard the leading axis across the two v7x TensorCores.
        dims = (pltpu.CORE_PARALLEL, pltpu.ARBITRARY)
    else:
        dims = ("arbitrary", "arbitrary")

    out = pl.pallas_call(
        kernel,
        out_shape=jax.ShapeDtypeStruct((n_par, n_terms, _LANES), jnp.float32),
        grid_spec=pltpu.PrefetchScalarGridSpec(
            num_scalar_prefetch=0,
            grid=(n_par, tiles_per_par),
            in_specs=in_specs,
            out_specs=pl.BlockSpec((1, n_terms, _LANES), lambda p, k: (p, 0, 0)),
            scratch_shapes=[pltpu.VMEM((acc_rows, _LANES), jnp.float32)] * n_terms,
        ),
        compiler_params=pltpu.CompilerParams(
            dimension_semantics=dims,
            vmem_limit_bytes=tp["vmem_limit"],
        ),
        cost_estimate=pl.CostEstimate(
            flops=8 * n_terms * total,
            transcendentals=0,
            bytes_accessed=in_bytes + n_par * n_terms * _LANES * 4,
        ),
    )(*args)
    # Tiny wrapper-side epilogue: combine per-core, lane-wide partials.
    return out.sum(axis=(0, 2))


def _relu(x):
    return jnp.maximum(x, 0.0)


@functools.partial(jax.jit, static_argnames=("gan_type",))
def adversarial_loss(fake_score_G, fake_score_D, real_score, gan_type="gan"):
    if gan_type not in ("gan", "rgan", "ragan"):
        raise ValueError("Incorrect `gan_type` argument")
    total = int(real_score.size)
    if fake_score_G.size != total or fake_score_D.size != total:
        raise ValueError("fake_score_G, fake_score_D, real_score must have equal numel")

    rows = pl.cdiv(total, _LANES)
    real2d = _as_slab(real_score, rows)
    fd2d = _as_slab(fake_score_D, rows)
    fg2d = _as_slab(fake_score_G, rows)
    inv_n = jnp.float32(1.0 / total)

    if gan_type == "gan":
        tp = _tiling(total, n_operands=3)
        term_fns = [
            lambda v, c: _relu(1.0 - v[0]) + _relu(1.0 + v[1]),   # -> loss_D
            lambda v, c: v[2],                                    # -> loss_G (plain mean)
        ]
        sums = _streaming_sums(term_fns, [real2d, fd2d, fg2d], total, tp)
        loss_d = sums[0] * inv_n
        loss_g = -sums[1] * inv_n

    elif gan_type == "rgan":
        # relu(1 - (real - fd)) == relu(1 + (fd - real)): the two loss_D hinges
        # are identical -> accumulate one of them and double in the wrapper.
        tp = _tiling(total, n_operands=3)
        term_fns = [
            lambda v, c: _relu(1.0 + (v[1] - v[0])),                        # loss_D / 2
            lambda v, c: _relu(1.0 - (v[1] - v[0])) + _relu(1.0 + v[0] - v[2]),  # loss_G
        ]
        sums = _streaming_sums(term_fns, [real2d, fd2d, fg2d], total, tp)
        loss_d = 2.0 * sums[0] * inv_n
        loss_g = sums[1] * inv_n

    else:  # 'ragan'
        # Pass 1: global sums of real_score / fake_score_D (their means are
        # needed before the hinge terms can be formed). Only 2 operands are
        # streamed, so this pass gets a ~1.5x larger tile for the same budget.
        tp1 = _tiling(total, n_operands=2)
        sums1 = _streaming_sums([lambda v, c: v[0], lambda v, c: v[1]],
                                [real2d, fd2d], total, tp1)
        mean_real = sums1[0] * inv_n
        mean_fd = sums1[1] * inv_n
        # Fold the means into the hinge constants so the kernel does a single
        # broadcast-add/sub per hinge instead of per-element offset subtraction.
        consts = jnp.stack([1.0 + mean_fd,    # c0: relu(c0 - real)
                            1.0 - mean_real,  # c1: relu(c1 + fd)
                            1.0 - mean_fd,    # c2: relu(c2 + real)
                            1.0 + mean_real]  # c3: relu(c3 - fg)
                           ).astype(jnp.float32)

        tp = _tiling(total, n_operands=3)
        term_fns = [
            lambda v, c: _relu(c[0] - v[0]) + _relu(c[1] + v[1]),   # -> loss_D
            lambda v, c: _relu(c[2] + v[0]) + _relu(c[3] - v[2]),   # -> loss_G
        ]
        sums = _streaming_sums(term_fns, [real2d, fd2d, fg2d], total, tp,
                               consts=consts)
        loss_d = sums[0] * inv_n
        loss_g = sums[1] * inv_n

    return loss_g, loss_d


def _adversarial_loss_ref(fake_score_G, fake_score_D, real_score, gan_type):
    """Pure-jnp reference matching the PyTorch module."""
    def preds(real, fake):
        if gan_type == "gan":
            return real, fake
        if gan_type == "rgan":
            return real - fake, fake - real
        return real - fake.mean(), fake - real.mean()

    relu = lambda x: jnp.maximum(x, 0.0)
    real_pred, fake_pred_d = preds(real_score, fake_score_D)
    _, fake_pred_g = preds(real_score, fake_score_G)
    loss_d = relu(1.0 - real_pred).mean() + relu(1.0 + fake_pred_d).mean()
    if gan_type == "gan":
        loss_g = -fake_pred_g.mean()
    else:
        loss_g = relu(1.0 + real_pred).mean() + relu(1.0 - fake_pred_g).mean()
    return loss_g, loss_d


if __name__ == "__main__":
    key = jax.random.PRNGKey(0)
    k1, k2, k3 = jax.random.split(key, 3)
    # (2,4,16,16): clean multiple of 128 (fast path); (3,5,7,11): ragged tail
    # exercising the masked path.
    for shape in ((2, 4, 16, 16), (3, 5, 7, 11)):
        fake_g = jax.random.normal(k1, shape, dtype=jnp.float32)
        fake_d = jax.random.normal(k2, shape, dtype=jnp.float32)
        real = jax.random.normal(k3, shape, dtype=jnp.float32)
        for gt in ("gan", "rgan", "ragan"):
            loss_g, loss_d = adversarial_loss(fake_g, fake_d, real, gan_type=gt)
            loss_g, loss_d = jax.block_until_ready((loss_g, loss_d))
            ref_g, ref_d = _adversarial_loss_ref(fake_g, fake_d, real, gt)
            assert jnp.allclose(loss_g, ref_g, atol=1e-5, rtol=1e-5), \
                (shape, gt, loss_g, ref_g)
            assert jnp.allclose(loss_d, ref_d, atol=1e-5, rtol=1e-5), \
                (shape, gt, loss_d, ref_d)

    print("KERNEL_OK")
</pallas_src>

<mosaic_0001>
module attributes {stable_mosaic.version = 11 : i64} {
  func.func @kernel(%arg0: i32, %arg1: i32, %arg2: memref<16x128xf32, #tpu.memory_space<vmem>>, %arg3: memref<16x128xf32, #tpu.memory_space<vmem>>, %arg4: memref<16x128xf32, #tpu.memory_space<vmem>>, %arg5: memref<1x2x128xf32, #tpu.memory_space<vmem>>, %arg6: memref<8x128xf32, #tpu.memory_space<vmem>>, %arg7: memref<8x128xf32, #tpu.memory_space<vmem>>) attributes {dimension_semantics = [#tpu.dimension_semantics<arbitrary>, #tpu.dimension_semantics<arbitrary>], iteration_bounds = array<i64: 1, 1>, scalar_prefetch = 0 : i64, scratch_operands = 2 : i64, tpu.core_type = #tpu.core_type<tc>, window_params = [{transform_indices = @transform_0, window_bounds = array<i64: 16, 128>}, {transform_indices = @transform_1, window_bounds = array<i64: 16, 128>}, {transform_indices = @transform_2, window_bounds = array<i64: 16, 128>}, {transform_indices = @transform_3, window_bounds = array<i64: 1, 2, 128>}]} {
    %c0_i32 = arith.constant 0 : i32
    %0 = arith.cmpi eq, %arg1, %c0_i32 : i32
    %1 = arith.extui %0 : i1 to i32
    %c0_i32_0 = arith.constant 0 : i32
    %2 = arith.cmpi ne, %1, %c0_i32_0 : i32
    scf.if %2 {
      %cst_21 = arith.constant 0.000000e+00 : f32
      %28 = vector.broadcast %cst_21 : f32 to vector<8x128xf32>
      %c0_22 = arith.constant 0 : index
      %c0_23 = arith.constant 0 : index
      %29 = vector.load %arg6[%c0_22, %c0_23] : memref<8x128xf32, #tpu.memory_space<vmem>>, vector<8x128xf32>
      tpu.vector_store %arg6[%c0_22, %c0_23], %28 {strides = array<i32>} : memref<8x128xf32, #tpu.memory_space<vmem>>, vector<8x128xf32>,
      %cst_24 = arith.constant 0.000000e+00 : f32
      %30 = vector.broadcast %cst_24 : f32 to vector<8x128xf32>
      %c0_25 = arith.constant 0 : index
      %c0_26 = arith.constant 0 : index
      %31 = vector.load %arg7[%c0_25, %c0_26] : memref<8x128xf32, #tpu.memory_space<vmem>>, vector<8x128xf32>
      tpu.vector_store %arg7[%c0_25, %c0_26], %30 {strides = array<i32>} : memref<8x128xf32, #tpu.memory_space<vmem>>, vector<8x128xf32>,
    } else {
    }
    %c0 = arith.constant 0 : index
    %c0_1 = arith.constant 0 : index
    %3 = vector.load %arg2[%c0, %c0_1] : memref<16x128xf32, #tpu.memory_space<vmem>>, vector<16x128xf32>
    %c0_2 = arith.constant 0 : index
    %c0_3 = arith.constant 0 : index
    %4 = vector.load %arg3[%c0_2, %c0_3] : memref<16x128xf32, #tpu.memory_space<vmem>>, vector<16x128xf32>
    %c0_4 = arith.constant 0 : index
    %c0_5 = arith.constant 0 : index
    %5 = vector.load %arg4[%c0_4, %c0_5] : memref<16x128xf32, #tpu.memory_space<vmem>>, vector<16x128xf32>
    %cst = arith.constant 1.000000e+00 : f32
    %6 = vector.broadcast %cst : f32 to vector<16x128xf32>
    %7 = arith.subf %6, %3 : vector<16x128xf32>
    %cst_6 = arith.constant 0.000000e+00 : f32
    %8 = vector.broadcast %cst_6 : f32 to vector<16x128xf32>
    %9 = arith.maximumf %7, %8 : vector<16x128xf32>
    %cst_7 = arith.constant 1.000000e+00 : f32
    %10 = vector.broadcast %cst_7 : f32 to vector<16x128xf32>
    %11 = arith.addf %10, %4 : vector<16x128xf32>
    %cst_8 = arith.constant 0.000000e+00 : f32
    %12 = vector.broadcast %cst_8 : f32 to vector<16x128xf32>
    %13 = arith.maximumf %11, %12 : vector<16x128xf32>
    %14 = arith.addf %9, %13 : vector<16x128xf32>
    %c0_9 = arith.constant 0 : index
    %c0_10 = arith.constant 0 : index
    %15 = vector.load %arg6[%c0_9, %c0_10] : memref<8x128xf32, #tpu.memory_space<vmem>>, vector<8x128xf32>
    %16 = vector.shape_cast %14 : vector<16x128xf32> to vector<2x8x128xf32>
    %cst_11 = arith.constant dense<0.000000e+00> : vector<8x128xf32>
    %17 = vector.multi_reduction <add>, %16, %cst_11 [0] : vector<2x8x128xf32> to vector<8x128xf32>
    %18 = arith.addf %15, %17 : vector<8x128xf32>
    %c0_12 = arith.constant 0 : index
    %c0_13 = arith.constant 0 : index
    %19 = vector.load %arg6[%c0_12, %c0_13] : memref<8x128xf32, #tpu.memory_space<vmem>>, vector<8x128xf32>
    tpu.vector_store %arg6[%c0_12, %c0_13], %18 {strides = array<i32>} : memref<8x128xf32, #tpu.memory_space<vmem>>, vector<8x128xf32>,
    %c0_14 = arith.constant 0 : index
    %c0_15 = arith.constant 0 : index
    %20 = vector.load %arg7[%c0_14, %c0_15] : memref<8x128xf32, #tpu.memory_space<vmem>>, vector<8x128xf32>
    %21 = vector.shape_cast %5 : vector<16x128xf32> to vector<2x8x128xf32>
    %cst_16 = arith.constant dense<0.000000e+00> : vector<8x128xf32>
    %22 = vector.multi_reduction <add>, %21, %cst_16 [0] : vector<2x8x128xf32> to vector<8x128xf32>
    %23 = arith.addf %20, %22 : vector<8x128xf32>
    %c0_17 = arith.constant 0 : index
    %c0_18 = arith.constant 0 : index
    %24 = vector.load %arg7[%c0_17, %c0_18] : memref<8x128xf32, #tpu.memory_space<vmem>>, vector<8x128xf32>
    tpu.vector_store %arg7[%c0_17, %c0_18], %23 {strides = array<i32>} : memref<8x128xf32, #tpu.memory_space<vmem>>, vector<8x128xf32>,
    %c0_i32_19 = arith.constant 0 : i32
    %25 = arith.cmpi eq, %arg1, %c0_i32_19 : i32
    %26 = arith.extui %25 : i1 to i32
    %c0_i32_20 = arith.constant 0 : i32
    %27 = arith.cmpi ne, %26, %c0_i32_20 : i32
    scf.if %27 {
      %c0_21 = arith.constant 0 : index
      %c0_22 = arith.constant 0 : index
      %28 = vector.load %arg6[%c0_21, %c0_22] : memref<8x128xf32, #tpu.memory_space<vmem>>, vector<8x128xf32>
      %cst_23 = arith.constant dense<0.000000e+00> : vector<128xf32>
      %29 = vector.multi_reduction <add>, %28, %cst_23 [0] : vector<8x128xf32> to vector<128xf32>
      %30 = vector.shape_cast %29 : vector<128xf32> to vector<1x128xf32>
      %c0_24 = arith.constant 0 : index
      %c0_25 = arith.constant 0 : index
      %c0_26 = arith.constant 0 : index
      %31 = vector.load %arg5[%c0_24, %c0_25, %c0_26] : memref<1x2x128xf32, #tpu.memory_space<vmem>>, vector<1x1x128xf32>
      %32 = vector.shape_cast %31 : vector<1x1x128xf32> to vector<1x128xf32>
      %33 = vector.shape_cast %30 : vector<1x128xf32> to vector<1x1x128xf32>
      tpu.vector_store %arg5[%c0_24, %c0_25, %c0_26], %33 {strides = array<i32>} : memref<1x2x128xf32, #tpu.memory_space<vmem>>, vector<1x1x128xf32>,
      %c0_27 = arith.constant 0 : index
      %c0_28 = arith.constant 0 : index
      %34 = vector.load %arg7[%c0_27, %c0_28] : memref<8x128xf32, #tpu.memory_space<vmem>>, vector<8x128xf32>
      %cst_29 = arith.constant dense<0.000000e+00> : vector<128xf32>
      %35 = vector.multi_reduction <add>, %34, %cst_29 [0] : vector<8x128xf32> to vector<128xf32>
      %36 = vector.shape_cast %35 : vector<128xf32> to vector<1x128xf32>
      %c0_30 = arith.constant 0 : index
      %c1 = arith.constant 1 : index
      %c0_31 = arith.constant 0 : index
      %37 = vector.load %arg5[%c0_30, %c1, %c0_31] : memref<1x2x128xf32, #tpu.memory_space<vmem>>, vector<1x1x128xf32>
      %38 = vector.shape_cast %37 : vector<1x1x128xf32> to vector<1x128xf32>
      %39 = vector.shape_cast %36 : vector<1x128xf32> to vector<1x1x128xf32>
      tpu.vector_store %arg5[%c0_30, %c1, %c0_31], %39 {strides = array<i32>} : memref<1x2x128xf32, #tpu.memory_space<vmem>>, vector<1x1x128xf32>,
    } else {
    }
    return
  }
  func.func @transform_0(%arg0: i32, %arg1: i32) -> (i32, i32) {
    %c1_i32 = arith.constant 1 : i32
    %0 = arith.muli %arg0, %c1_i32 : i32
    %1 = arith.addi %0, %arg1 : i32
    %c0_i32 = arith.constant 0 : i32
    %2 = arith.minsi %1, %c0_i32 : i32
    %c0_i32_0 = arith.constant 0 : i32
    %c0_i32_1 = arith.constant 0 : i32
    return %2, %c0_i32_0 : i32, i32
  }
  func.func @transform_1(%arg0: i32, %arg1: i32) -> (i32, i32) {
    %c1_i32 = arith.constant 1 : i32
    %0 = arith.muli %arg0, %c1_i32 : i32
    %1 = arith.addi %0, %arg1 : i32
    %c0_i32 = arith.constant 0 : i32
    %2 = arith.minsi %1, %c0_i32 : i32
    %c0_i32_0 = arith.constant 0 : i32
    %c0_i32_1 = arith.constant 0 : i32
    return %2, %c0_i32_0 : i32, i32
  }
  func.func @transform_2(%arg0: i32, %arg1: i32) -> (i32, i32) {
    %c1_i32 = arith.constant 1 : i32
    %0 = arith.muli %arg0, %c1_i32 : i32
    %1 = arith.addi %0, %arg1 : i32
    %c0_i32 = arith.constant 0 : i32
    %2 = arith.minsi %1, %c0_i32 : i32
    %c0_i32_0 = arith.constant 0 : i32
    %c0_i32_1 = arith.constant 0 : i32
    return %2, %c0_i32_0 : i32, i32
  }
  func.func @transform_3(%arg0: i32, %arg1: i32) -> (i32, i32, i32) {
    %c0_i32 = arith.constant 0 : i32
    %c0_i32_0 = arith.constant 0 : i32
    %c0_i32_1 = arith.constant 0 : i32
    return %arg0, %c0_i32, %c0_i32_0 : i32, i32, i32
  }
}

</mosaic_0001>

<bundles_post_ra>
// kernel: adversarial_loss.1
= control target key start
LH: loop header
LB: loop body
LE: loop exit
PB: predicated region body
PF: predicated region fallthrough
CT: control target
= control target key end

     0   :  { %s225_s0 = inlined_call_operand.vmem [shape: f32[16,128], index: 0, kind: input, shape index: {}]   ;;  %s226_s1 = inlined_call_operand.vmem [shape: f32[16,128], index: 1, kind: input, shape index: {}]   ;;  %s227_s2 = inlined_call_operand.vmem [shape: f32[16,128], index: 2, kind: input, shape index: {}]   ;;  %s228_s3 = inlined_call_operand.vmem [shape: f32[1,2,128], index: 3, kind: output, shape index: {}]  }
   0x1   :  { %v116_v0 = vld [vmem:[%s225_s0] sm:$0xff]  ;;  %v117_v1 = vld [vmem:[%s225_s0 + $0x8] sm:$0xff] }
   0x2   :  { %v118_v2 = vld [vmem:[%s226_s1] sm:$0xff]  ;;  %v119_v3 = vld [vmem:[%s226_s1 + $0x8] sm:$0xff]  ;;  %v122_v4 = vsub.f32 1.0, %v116_v0  ;;  %v123_v5 = vsub.f32 1.0, %v117_v1 }
   0x3   :  { %v126_v6 = vadd.f32 1.0, %v118_v2  ;;  %v120_v7 = vld [vmem:[%s227_s2] sm:$0xff]  ;;  %v121_v8 = vld [vmem:[%s227_s2 + $0x8] sm:$0xff]  ;;  %v127_v9 = vadd.f32 1.0, %v119_v3 }
   0x4   :  { %v137_v10 = vadd.f32 %v121_v8, %v120_v7  ;;  %v124_v11 = vmax.f32 %v122_v4, 0.0  ;;  %v125_v12 = vmax.f32 %v123_v5, 0.0 }
   0x5   :  { %v128_v13 = vmax.f32 %v126_v6, 0.0  ;;  %v129_v14 = vmax.f32 %v127_v9, 0.0 }
   0x6   :  { %v152_v15 = vrot.slane %v137_v10, 4 }
   0x7   :  { %v130_v16 = vadd.f32 %v128_v13, %v124_v11  ;;  %v131_v17 = vadd.f32 %v129_v14, %v125_v12 }
   0x8   :  { %v153_v18 = vadd.f32 %v152_v15, %v137_v10 }
   0x9   :  { %v133_v19 = vadd.f32 %v131_v17, %v130_v16 }
   0xa   :  { %v154_v20 = vrot.slane %v153_v18, 2 }
   0xb   :  { %v144_v21 = vrot.slane %v133_v19, 4 }
   0xc   :  { %v155_v22 = vadd.f32 %v154_v20, %v153_v18 }
   0xd   :  { %v145_v23 = vadd.f32 %v144_v21, %v133_v19 }
   0xe   :  { %v156_v24 = vrot.slane %v155_v22, 1 }
   0xf   :  { %v146_v25 = vrot.slane %v145_v23, 2 }
  0x10   :  { %v157_v26 = vadd.f32 %v156_v24, %v155_v22 }
  0x11   :  { %v147_v27 = vadd.f32 %v146_v25, %v145_v23 }
  0x12   :  { %158 = vst [vmem:[%s228_s3 + $0x1] sm:$0x1] %v157_v26 }
  0x13   :  { %v148_v28 = vrot.slane %v147_v27, 1 }
  0x15   :  { %v149_v29 = vadd.f32 %v148_v28, %v147_v27 }
  0x17   :  { %150 = vst [vmem:[%s228_s3] sm:$0x1] %v149_v29 }

</bundles_post_ra>
